<compile_context>
chip_gen: v7x
topology: tpu7x:2x2x1
jax: 0.10.0
libtpu: 0.0.40
codegen_flags: <defaults>
</compile_context>

<pallas_src>
import functools

import jax
import jax.numpy as jnp
from jax import lax
from jax.experimental import pallas as pl
from jax.experimental.pallas import tpu as pltpu


# ----------------------------- Pallas kernel -------------------------------- #

def _stem_fused_kernel(patch_ref, halo_ref, w_ref, bias_ref, o_ref, *, tr, ow, pw):
    """Fused conv(7x7,s2) + folded-BN bias + ReLU + maxpool(3x3,s2) for one row tile.

    patch_ref: (tr*ow, K)  bf16   im2col patches for conv rows [t*tr, (t+1)*tr)
                                  (columns swizzled to [even | odd] per conv row)
    halo_ref:  (ow, K)     bf16   patches of conv row t*tr - 1 (clamped to 0 at t=0)
    w_ref:     (K, Cout)   bf16   conv weights with BN scale folded in
    bias_ref:  (1, Cout)   f32    folded BN bias
    o_ref:     ((tr//2)*pw, Cout) f32   pooled output rows for this tile
    """
    w = w_ref[...]
    b = bias_ref[...]

    # conv + BN bias + ReLU: one big-K matmul (f32 accumulate on the MXU)
    y = jnp.dot(patch_ref[...], w, preferred_element_type=jnp.float32)
    y = jnp.maximum(y + b, 0.0)                                   # (tr*ow, Cout)
    h = jnp.dot(halo_ref[...], w, preferred_element_type=jnp.float32)
    h = jnp.maximum(h + b, 0.0)                                   # (ow, Cout)

    def col_pool(row):
        # row is one conv row in swizzled order: [cols 0,2,..,ow-2 | cols 1,3,..,ow-1]
        even = row[:pw, :]                                        # col 2j
        odd = row[pw:, :]                                         # col 2j+1
        left = jnp.concatenate([odd[:1, :], odd[:-1, :]], axis=0)  # col 2j-1 (clamped)
        return jnp.maximum(jnp.maximum(even, odd), left)          # (pw, Cout)

    # column-pooled value of every conv row this tile can see (halo row first)
    cps = [col_pool(h)]
    for r in range(tr):
        cps.append(col_pool(y[r * ow:(r + 1) * ow, :]))

    # row pooling: pooled local row i uses conv local rows {2i-1, 2i, 2i+1}
    rows = [jnp.maximum(jnp.maximum(cps[2 * i], cps[2 * i + 1]), cps[2 * i + 2])
            for i in range(tr // 2)]
    o_ref[...] = jnp.concatenate(rows, axis=0)


# ------------------------------- wrapper ------------------------------------ #

def _pick_row_tile(oh, pw, target=8):
    """Pick an even conv-row tile TR | OH with an (8,128)-friendly output block."""
    best = None
    for tr in range(2, min(oh, target) + 1, 2):
        if oh % tr == 0 and ((tr // 2) * pw) % 8 == 0:
            best = tr
    return best if best is not None else oh   # fall back to a single tile


def rn_start_block_forward(x_nchw, params, eps=1e-3):
    """Forward pass of RNStartBlock.  Input / output are NCHW (PyTorch layout)."""
    w = params["w"]                                   # (Cout, Cin, 7, 7) OIHW
    gamma, beta = params["gamma"], params["beta"]
    rmean, rvar = params["rmean"], params["rvar"]

    N, Cin, H, W = x_nchw.shape
    Cout, _, KH, KW = w.shape
    stride, pad = 2, 3
    # TODO(synk): general/odd spatial sizes need edge-padded patches; the tested
    # stem sizes (16, 32, ..., 224) all satisfy these constraints.
    assert H % 4 == 0 and W % 16 == 0, "need H % 4 == 0 and W % 16 == 0"

    OH = (H + 2 * pad - KH) // stride + 1             # = H // 2  (even)
    OW = (W + 2 * pad - KW) // stride + 1             # = W // 2  (multiple of 8)
    POH, POW = OH // 2, OW // 2
    K = KH * KW * Cin

    # ---- im2col (lane-dense patches, K on lanes), bf16 operands ----
    x = jnp.transpose(x_nchw, (0, 2, 3, 1)).astype(jnp.float32)        # NHWC
    xp = jnp.pad(x, ((0, 0), (pad, pad), (pad, pad), (0, 0)))
    taps = [xp[:, kh:kh + 2 * OH - 1:2, kw:kw + 2 * OW - 1:2, :]
            for kh in range(KH) for kw in range(KW)]
    patches = jnp.concatenate(taps, axis=-1)                           # (N, OH, OW, K)
    # swizzle columns to [even | odd] so the fused pool only needs contiguous slices
    patches = jnp.concatenate([patches[:, :, 0::2, :], patches[:, :, 1::2, :]], axis=2)
    patches = patches.reshape(N, OH * OW, K).astype(jnp.bfloat16)

    # ---- fold BatchNorm (inference running stats) into weights / bias ----
    # TODO(synk): training-mode BatchNorm (batch statistics) not implemented.
    scale = (gamma / jnp.sqrt(rvar + eps)).astype(jnp.float32)
    bias = (beta - rmean * scale).astype(jnp.float32)
    w_kc = jnp.transpose(w, (2, 3, 1, 0)).reshape(K, Cout).astype(jnp.float32)
    w_folded = (w_kc * scale[None, :]).astype(jnp.bfloat16)

    TR = _pick_row_tile(OH, POW)                      # conv rows per tile (even)
    T = OH // TR
    TP = TR // 2                                      # pooled rows per tile

    kernel = functools.partial(_stem_fused_kernel, tr=TR, ow=OW, pw=POW)

    out_flat = pl.pallas_call(
        kernel,
        out_shape=jax.ShapeDtypeStruct((N, POH * POW, Cout), jnp.float32),
        grid_spec=pltpu.PrefetchScalarGridSpec(
            num_scalar_prefetch=0,
            grid=(N, T),
            in_specs=[
                # main patch block: conv rows [t*TR, (t+1)*TR)
                pl.BlockSpec((None, TR * OW, K), lambda n, t: (n, t, 0)),
                # halo: conv row t*TR - 1 (clamped to 0 -> duplicate == correct pool edge)
                pl.BlockSpec((None, OW, K),
                             lambda n, t: (n, jnp.maximum(t * TR - 1, 0), 0)),
                pl.BlockSpec((K, Cout), lambda n, t: (0, 0)),
                pl.BlockSpec((1, Cout), lambda n, t: (0, 0)),
            ],
            out_specs=pl.BlockSpec((None, TP * POW, Cout), lambda n, t: (n, t, 0)),
        ),
        compiler_params=pltpu.CompilerParams(
            dimension_semantics=("parallel", "parallel")),
    )(patches, patches, w_folded, bias[None, :])

    out = out_flat.reshape(N, POH, POW, Cout)
    return jnp.transpose(out, (0, 3, 1, 2))                            # back to NCHW


# --------------------------- pure-JAX reference ------------------------------ #

def _reference_forward(x_nchw, params, eps=1e-3, quantize=True):
    """f32 reference.  quantize=True mimics the kernel's bf16 operand rounding."""
    scale = params["gamma"] / jnp.sqrt(params["rvar"] + eps)
    bias = params["beta"] - params["rmean"] * scale
    w_folded = params["w"].astype(jnp.float32) * scale[:, None, None, None]
    x = x_nchw.astype(jnp.float32)
    if quantize:
        x = x.astype(jnp.bfloat16).astype(jnp.float32)
        w_folded = w_folded.astype(jnp.bfloat16).astype(jnp.float32)
    y = lax.conv_general_dilated(
        x, w_folded, window_strides=(2, 2), padding=((3, 3), (3, 3)),
        dimension_numbers=("NCHW", "OIHW", "NCHW"))
    y = jnp.maximum(y + bias[None, :, None, None], 0.0)
    y = lax.reduce_window(
        y, -jnp.inf, lax.max,
        window_dimensions=(1, 1, 3, 3),
        window_strides=(1, 1, 2, 2),
        padding=((0, 0), (0, 0), (1, 1), (1, 1)))
    return y


# ---------------------------------- main ------------------------------------- #

if __name__ == "__main__":
    key = jax.random.PRNGKey(0)
    k_x, k_w, k_g, k_b, k_m, k_v, k_x2 = jax.random.split(key, 7)

    N, Cin, H, W = 2, 3, 16, 16            # module default n_inpch=3
    Cout = 64

    x = jax.random.normal(k_x, (N, Cin, H, W), jnp.float32)
    params = dict(
        w=jax.random.normal(k_w, (Cout, Cin, 7, 7), jnp.float32) * 0.1,
        gamma=jax.random.uniform(k_g, (Cout,), jnp.float32, 0.5, 1.5),
        beta=jax.random.normal(k_b, (Cout,), jnp.float32) * 0.1,
        rmean=jax.random.normal(k_m, (Cout,), jnp.float32) * 0.1,
        rvar=jax.random.uniform(k_v, (Cout,), jnp.float32, 0.5, 1.5),
    )

    fwd = jax.jit(rn_start_block_forward)
    out = jax.block_until_ready(fwd(x, params))
    assert out.shape == (N, Cout, H // 4, W // 4), out.shape

    # tight check: same bf16 operand rounding as the kernel, f32 accumulation
    ref_q = _reference_forward(x, params, quantize=True)
    if not jnp.allclose(out, ref_q, atol=2e-3, rtol=2e-3):
        err = float(jnp.max(jnp.abs(out - ref_q)))
        raise AssertionError(f"Pallas kernel mismatch vs bf16-quantized reference ({err})")

    # loose sanity check vs the full-f32 module semantics (bounds bf16 input quantization)
    ref_f = _reference_forward(x, params, quantize=False)
    if not jnp.allclose(out, ref_f, atol=5e-2, rtol=5e-2):
        err = float(jnp.max(jnp.abs(out - ref_f)))
        raise AssertionError(f"Pallas kernel mismatch vs f32 reference ({err})")

    # second case exercises the multi-row-tile path (grid T=2) and a real halo row
    x2 = jax.random.normal(k_x2, (1, Cin, 32, 32), jnp.float32)
    out2 = jax.block_until_ready(jax.jit(rn_start_block_forward)(x2, params))
    assert out2.shape == (1, Cout, 8, 8), out2.shape
    ref2 = _reference_forward(x2, params, quantize=True)
    if not jnp.allclose(out2, ref2, atol=2e-3, rtol=2e-3):
        raise AssertionError("Pallas kernel mismatch vs reference (32x32, multi-tile)")

    print("KERNEL_OK")
</pallas_src>

<mosaic_0001>
module attributes {stable_mosaic.version = 11 : i64} {
  func.func @_stem_fused_kernel(%arg0: i32, %arg1: i32, %arg2: memref<1x64x147xbf16, #tpu.memory_space<vmem>>, %arg3: memref<1x8x147xbf16, #tpu.memory_space<vmem>>, %arg4: memref<147x64xbf16, #tpu.memory_space<vmem>>, %arg5: memref<1x64xf32, #tpu.memory_space<vmem>>, %arg6: memref<1x16x64xf32, #tpu.memory_space<vmem>>) attributes {dimension_semantics = [#tpu.dimension_semantics<parallel>, #tpu.dimension_semantics<parallel>], iteration_bounds = array<i64: 2, 1>, scalar_prefetch = 0 : i64, scratch_operands = 0 : i64, tpu.core_type = #tpu.core_type<tc>, window_params = [{transform_indices = @transform_0, window_bounds = array<i64: 1, 64, 147>}, {transform_indices = @transform_1, window_bounds = array<i64: 1, 8, 147>}, {pipeline_mode = #tpu.pipeline_mode<synchronous>, transform_indices = @transform_2, window_bounds = array<i64: 147, 64>}, {pipeline_mode = #tpu.pipeline_mode<synchronous>, transform_indices = @transform_3, window_bounds = array<i64: 1, 64>}, {transform_indices = @transform_4, window_bounds = array<i64: 1, 16, 64>}]} {
    %c0 = arith.constant 0 : index
    %c0_0 = arith.constant 0 : index
    %0 = vector.load %arg4[%c0, %c0_0] : memref<147x64xbf16, #tpu.memory_space<vmem>>, vector<147x64xbf16>
    %c0_1 = arith.constant 0 : index
    %c0_2 = arith.constant 0 : index
    %1 = vector.load %arg5[%c0_1, %c0_2] : memref<1x64xf32, #tpu.memory_space<vmem>>, vector<1x64xf32>
    %c0_3 = arith.constant 0 : index
    %c0_4 = arith.constant 0 : index
    %c0_5 = arith.constant 0 : index
    %2 = vector.load %arg2[%c0_3, %c0_4, %c0_5] : memref<1x64x147xbf16, #tpu.memory_space<vmem>>, vector<1x64x147xbf16>
    %3 = vector.shape_cast %2 : vector<1x64x147xbf16> to vector<64x147xbf16>
    %cst = arith.constant dense<0.000000e+00> : vector<64x64xf32>
    %4 = tpu.matmul %3, %0, %cst {dimension_numbers = #tpu.dot_dimension_numbers<[1], [0], [0], [1], [0, 0, 1, 1], [], []>} : vector<64x147xbf16>, vector<147x64xbf16>, vector<64x64xf32> -> vector<64x64xf32>
    %5 = vector.broadcast %1 : vector<1x64xf32> to vector<64x64xf32>
    %6 = arith.addf %4, %5 : vector<64x64xf32>
    %cst_6 = arith.constant 0.000000e+00 : f32
    %7 = vector.broadcast %cst_6 : f32 to vector<64x64xf32>
    %8 = arith.maximumf %6, %7 : vector<64x64xf32>
    %c0_7 = arith.constant 0 : index
    %c0_8 = arith.constant 0 : index
    %c0_9 = arith.constant 0 : index
    %9 = vector.load %arg3[%c0_7, %c0_8, %c0_9] : memref<1x8x147xbf16, #tpu.memory_space<vmem>>, vector<1x8x147xbf16>
    %10 = vector.shape_cast %9 : vector<1x8x147xbf16> to vector<8x147xbf16>
    %cst_10 = arith.constant dense<0.000000e+00> : vector<8x64xf32>
    %11 = tpu.matmul %10, %0, %cst_10 {dimension_numbers = #tpu.dot_dimension_numbers<[1], [0], [0], [1], [0, 0, 1, 1], [], []>} : vector<8x147xbf16>, vector<147x64xbf16>, vector<8x64xf32> -> vector<8x64xf32>
    %12 = vector.broadcast %1 : vector<1x64xf32> to vector<8x64xf32>
    %13 = arith.addf %11, %12 : vector<8x64xf32>
    %cst_11 = arith.constant 0.000000e+00 : f32
    %14 = vector.broadcast %cst_11 : f32 to vector<8x64xf32>
    %15 = arith.maximumf %13, %14 : vector<8x64xf32>
    %16 = vector.extract_strided_slice %15 {offsets = [0, 0], sizes = [4, 64], strides = [1, 1]} : vector<8x64xf32> to vector<4x64xf32>
    %17 = vector.extract_strided_slice %15 {offsets = [4, 0], sizes = [4, 64], strides = [1, 1]} : vector<8x64xf32> to vector<4x64xf32>
    %18 = vector.extract_strided_slice %17 {offsets = [0, 0], sizes = [1, 64], strides = [1, 1]} : vector<4x64xf32> to vector<1x64xf32>
    %19 = vector.extract_strided_slice %17 {offsets = [0, 0], sizes = [3, 64], strides = [1, 1]} : vector<4x64xf32> to vector<3x64xf32>
    %20 = tpu.concatenate %18, %19 in 0 : vector<1x64xf32>, vector<3x64xf32> -> vector<4x64xf32>
    %21 = arith.maximumf %16, %17 : vector<4x64xf32>
    %22 = arith.maximumf %21, %20 : vector<4x64xf32>
    %23 = vector.extract_strided_slice %8 {offsets = [0, 0], sizes = [8, 64], strides = [1, 1]} : vector<64x64xf32> to vector<8x64xf32>
    %24 = vector.extract_strided_slice %23 {offsets = [0, 0], sizes = [4, 64], strides = [1, 1]} : vector<8x64xf32> to vector<4x64xf32>
    %25 = vector.extract_strided_slice %23 {offsets = [4, 0], sizes = [4, 64], strides = [1, 1]} : vector<8x64xf32> to vector<4x64xf32>
    %26 = vector.extract_strided_slice %25 {offsets = [0, 0], sizes = [1, 64], strides = [1, 1]} : vector<4x64xf32> to vector<1x64xf32>
    %27 = vector.extract_strided_slice %25 {offsets = [0, 0], sizes = [3, 64], strides = [1, 1]} : vector<4x64xf32> to vector<3x64xf32>
    %28 = tpu.concatenate %26, %27 in 0 : vector<1x64xf32>, vector<3x64xf32> -> vector<4x64xf32>
    %29 = arith.maximumf %24, %25 : vector<4x64xf32>
    %30 = arith.maximumf %29, %28 : vector<4x64xf32>
    %31 = vector.extract_strided_slice %8 {offsets = [8, 0], sizes = [8, 64], strides = [1, 1]} : vector<64x64xf32> to vector<8x64xf32>
    %32 = vector.extract_strided_slice %31 {offsets = [0, 0], sizes = [4, 64], strides = [1, 1]} : vector<8x64xf32> to vector<4x64xf32>
    %33 = vector.extract_strided_slice %31 {offsets = [4, 0], sizes = [4, 64], strides = [1, 1]} : vector<8x64xf32> to vector<4x64xf32>
    %34 = vector.extract_strided_slice %33 {offsets = [0, 0], sizes = [1, 64], strides = [1, 1]} : vector<4x64xf32> to vector<1x64xf32>
    %35 = vector.extract_strided_slice %33 {offsets = [0, 0], sizes = [3, 64], strides = [1, 1]} : vector<4x64xf32> to vector<3x64xf32>
    %36 = tpu.concatenate %34, %35 in 0 : vector<1x64xf32>, vector<3x64xf32> -> vector<4x64xf32>
    %37 = arith.maximumf %32, %33 : vector<4x64xf32>
    %38 = arith.maximumf %37, %36 : vector<4x64xf32>
    %39 = vector.extract_strided_slice %8 {offsets = [16, 0], sizes = [8, 64], strides = [1, 1]} : vector<64x64xf32> to vector<8x64xf32>
    %40 = vector.extract_strided_slice %39 {offsets = [0, 0], sizes = [4, 64], strides = [1, 1]} : vector<8x64xf32> to vector<4x64xf32>
    %41 = vector.extract_strided_slice %39 {offsets = [4, 0], sizes = [4, 64], strides = [1, 1]} : vector<8x64xf32> to vector<4x64xf32>
    %42 = vector.extract_strided_slice %41 {offsets = [0, 0], sizes = [1, 64], strides = [1, 1]} : vector<4x64xf32> to vector<1x64xf32>
    %43 = vector.extract_strided_slice %41 {offsets = [0, 0], sizes = [3, 64], strides = [1, 1]} : vector<4x64xf32> to vector<3x64xf32>
    %44 = tpu.concatenate %42, %43 in 0 : vector<1x64xf32>, vector<3x64xf32> -> vector<4x64xf32>
    %45 = arith.maximumf %40, %41 : vector<4x64xf32>
    %46 = arith.maximumf %45, %44 : vector<4x64xf32>
    %47 = vector.extract_strided_slice %8 {offsets = [24, 0], sizes = [8, 64], strides = [1, 1]} : vector<64x64xf32> to vector<8x64xf32>
    %48 = vector.extract_strided_slice %47 {offsets = [0, 0], sizes = [4, 64], strides = [1, 1]} : vector<8x64xf32> to vector<4x64xf32>
    %49 = vector.extract_strided_slice %47 {offsets = [4, 0], sizes = [4, 64], strides = [1, 1]} : vector<8x64xf32> to vector<4x64xf32>
    %50 = vector.extract_strided_slice %49 {offsets = [0, 0], sizes = [1, 64], strides = [1, 1]} : vector<4x64xf32> to vector<1x64xf32>
    %51 = vector.extract_strided_slice %49 {offsets = [0, 0], sizes = [3, 64], strides = [1, 1]} : vector<4x64xf32> to vector<3x64xf32>
    %52 = tpu.concatenate %50, %51 in 0 : vector<1x64xf32>, vector<3x64xf32> -> vector<4x64xf32>
    %53 = arith.maximumf %48, %49 : vector<4x64xf32>
    %54 = arith.maximumf %53, %52 : vector<4x64xf32>
    %55 = vector.extract_strided_slice %8 {offsets = [32, 0], sizes = [8, 64], strides = [1, 1]} : vector<64x64xf32> to vector<8x64xf32>
    %56 = vector.extract_strided_slice %55 {offsets = [0, 0], sizes = [4, 64], strides = [1, 1]} : vector<8x64xf32> to vector<4x64xf32>
    %57 = vector.extract_strided_slice %55 {offsets = [4, 0], sizes = [4, 64], strides = [1, 1]} : vector<8x64xf32> to vector<4x64xf32>
    %58 = vector.extract_strided_slice %57 {offsets = [0, 0], sizes = [1, 64], strides = [1, 1]} : vector<4x64xf32> to vector<1x64xf32>
    %59 = vector.extract_strided_slice %57 {offsets = [0, 0], sizes = [3, 64], strides = [1, 1]} : vector<4x64xf32> to vector<3x64xf32>
    %60 = tpu.concatenate %58, %59 in 0 : vector<1x64xf32>, vector<3x64xf32> -> vector<4x64xf32>
    %61 = arith.maximumf %56, %57 : vector<4x64xf32>
    %62 = arith.maximumf %61, %60 : vector<4x64xf32>
    %63 = vector.extract_strided_slice %8 {offsets = [40, 0], sizes = [8, 64], strides = [1, 1]} : vector<64x64xf32> to vector<8x64xf32>
    %64 = vector.extract_strided_slice %63 {offsets = [0, 0], sizes = [4, 64], strides = [1, 1]} : vector<8x64xf32> to vector<4x64xf32>
    %65 = vector.extract_strided_slice %63 {offsets = [4, 0], sizes = [4, 64], strides = [1, 1]} : vector<8x64xf32> to vector<4x64xf32>
    %66 = vector.extract_strided_slice %65 {offsets = [0, 0], sizes = [1, 64], strides = [1, 1]} : vector<4x64xf32> to vector<1x64xf32>
    %67 = vector.extract_strided_slice %65 {offsets = [0, 0], sizes = [3, 64], strides = [1, 1]} : vector<4x64xf32> to vector<3x64xf32>
    %68 = tpu.concatenate %66, %67 in 0 : vector<1x64xf32>, vector<3x64xf32> -> vector<4x64xf32>
    %69 = arith.maximumf %64, %65 : vector<4x64xf32>
    %70 = arith.maximumf %69, %68 : vector<4x64xf32>
    %71 = vector.extract_strided_slice %8 {offsets = [48, 0], sizes = [8, 64], strides = [1, 1]} : vector<64x64xf32> to vector<8x64xf32>
    %72 = vector.extract_strided_slice %71 {offsets = [0, 0], sizes = [4, 64], strides = [1, 1]} : vector<8x64xf32> to vector<4x64xf32>
    %73 = vector.extract_strided_slice %71 {offsets = [4, 0], sizes = [4, 64], strides = [1, 1]} : vector<8x64xf32> to vector<4x64xf32>
    %74 = vector.extract_strided_slice %73 {offsets = [0, 0], sizes = [1, 64], strides = [1, 1]} : vector<4x64xf32> to vector<1x64xf32>
    %75 = vector.extract_strided_slice %73 {offsets = [0, 0], sizes = [3, 64], strides = [1, 1]} : vector<4x64xf32> to vector<3x64xf32>
    %76 = tpu.concatenate %74, %75 in 0 : vector<1x64xf32>, vector<3x64xf32> -> vector<4x64xf32>
    %77 = arith.maximumf %72, %73 : vector<4x64xf32>
    %78 = arith.maximumf %77, %76 : vector<4x64xf32>
    %79 = vector.extract_strided_slice %8 {offsets = [56, 0], sizes = [8, 64], strides = [1, 1]} : vector<64x64xf32> to vector<8x64xf32>
    %80 = vector.extract_strided_slice %79 {offsets = [0, 0], sizes = [4, 64], strides = [1, 1]} : vector<8x64xf32> to vector<4x64xf32>
    %81 = vector.extract_strided_slice %79 {offsets = [4, 0], sizes = [4, 64], strides = [1, 1]} : vector<8x64xf32> to vector<4x64xf32>
    %82 = vector.extract_strided_slice %81 {offsets = [0, 0], sizes = [1, 64], strides = [1, 1]} : vector<4x64xf32> to vector<1x64xf32>
    %83 = vector.extract_strided_slice %81 {offsets = [0, 0], sizes = [3, 64], strides = [1, 1]} : vector<4x64xf32> to vector<3x64xf32>
    %84 = tpu.concatenate %82, %83 in 0 : vector<1x64xf32>, vector<3x64xf32> -> vector<4x64xf32>
    %85 = arith.maximumf %80, %81 : vector<4x64xf32>
    %86 = arith.maximumf %85, %84 : vector<4x64xf32>
    %87 = arith.maximumf %22, %30 : vector<4x64xf32>
    %88 = arith.maximumf %87, %38 : vector<4x64xf32>
    %89 = arith.maximumf %38, %46 : vector<4x64xf32>
    %90 = arith.maximumf %89, %54 : vector<4x64xf32>
    %91 = arith.maximumf %54, %62 : vector<4x64xf32>
    %92 = arith.maximumf %91, %70 : vector<4x64xf32>
    %93 = arith.maximumf %70, %78 : vector<4x64xf32>
    %94 = arith.maximumf %93, %86 : vector<4x64xf32>
    %95 = tpu.concatenate %88, %90, %92, %94 in 0 : vector<4x64xf32>, vector<4x64xf32>, vector<4x64xf32>, vector<4x64xf32> -> vector<16x64xf32>
    %c0_12 = arith.constant 0 : index
    %c0_13 = arith.constant 0 : index
    %c0_14 = arith.constant 0 : index
    %96 = vector.load %arg6[%c0_12, %c0_13, %c0_14] : memref<1x16x64xf32, #tpu.memory_space<vmem>>, vector<1x16x64xf32>
    %97 = vector.shape_cast %96 : vector<1x16x64xf32> to vector<16x64xf32>
    %98 = vector.shape_cast %95 : vector<16x64xf32> to vector<1x16x64xf32>
    tpu.vector_store %arg6[%c0_12, %c0_13, %c0_14], %98 {strides = array<i32>} : memref<1x16x64xf32, #tpu.memory_space<vmem>>, vector<1x16x64xf32>,
    return
  }
  func.func @transform_0(%arg0: i32, %arg1: i32) -> (i32, i32, i32) {
    %c0_i32 = arith.constant 0 : i32
    %c0_i32_0 = arith.constant 0 : i32
    return %arg0, %arg1, %c0_i32 : i32, i32, i32
  }
  func.func @transform_1(%arg0: i32, %arg1: i32) -> (i32, i32, i32) {
    %c8_i32 = arith.constant 8 : i32
    %0 = arith.muli %arg1, %c8_i32 : i32
    %c1_i32 = arith.constant 1 : i32
    %1 = arith.subi %0, %c1_i32 : i32
    %c0_i32 = arith.constant 0 : i32
    %2 = arith.maxsi %1, %c0_i32 : i32
    %c0_i32_0 = arith.constant 0 : i32
    %c0_i32_1 = arith.constant 0 : i32
    return %arg0, %2, %c0_i32_0 : i32, i32, i32
  }
  func.func @transform_2(%arg0: i32, %arg1: i32) -> (i32, i32) {
    %c0_i32 = arith.constant 0 : i32
    %c0_i32_0 = arith.constant 0 : i32
    %c0_i32_1 = arith.constant 0 : i32
    return %c0_i32, %c0_i32_0 : i32, i32
  }
  func.func @transform_3(%arg0: i32, %arg1: i32) -> (i32, i32) {
    %c0_i32 = arith.constant 0 : i32
    %c0_i32_0 = arith.constant 0 : i32
    %c0_i32_1 = arith.constant 0 : i32
    return %c0_i32, %c0_i32_0 : i32, i32
  }
  func.func @transform_4(%arg0: i32, %arg1: i32) -> (i32, i32, i32) {
    %c0_i32 = arith.constant 0 : i32
    %c0_i32_0 = arith.constant 0 : i32
    return %arg0, %arg1, %c0_i32 : i32, i32, i32
  }
}

</mosaic_0001>

<bundles_post_ra>
// kernel: rn_start_block_forward.1
= control target key start
LH: loop header
LB: loop body
LE: loop exit
PB: predicated region body
PF: predicated region fallthrough
CT: control target
= control target key end

     0   :  { %9 = vsyncpa [#allocation3], 0  ;;  %s1227_s0 = inlined_call_operand.vmem [shape: bf16[2,64,147], index: 0, kind: input, shape index: {}, may-alias: {0,1}]   ;;  %s1228_s1 = inlined_call_operand.vmem [shape: bf16[2,64,147], index: 1, kind: input, shape index: {}, may-alias: {0,1}]   ;;  %s1229_s2 = inlined_call_operand.vmem [shape: bf16[147,64], index: 2, kind: input, shape index: {}]   ;;  %s1230_s3 = inlined_call_operand.vmem [shape: f32[1,64], index: 3, kind: input, shape index: {}]   ;;  %s1231_s4 = inlined_call_operand.hbm [shape: f32[2,16,64], index: 4, kind: output, shape index: {}]  }
   0x1   :  { %11 = vsyncpa [#allocation3 + $0x1], 0  ;;  %s1012_s15 = smov 0   ;;  %s1014_s16 = smov 0  }
   0x2   :  { %s1016_s17 = smov 0   ;;  %s1018_s18 = smov 0  }
   0x3   :  { %s1020_s19 = smov 0   ;;  %s1022_s20 = smov 0  }
   0x4 LB: > { %s775_s21 = sadd.s32 4294967295, %s980_s20   ;;  %s776_s22 = sadd.s32 4294967294, %s980_s20   ;;  %s980_s20 = sphi %s1022_s20, %s17_s20   ;;  %s976_s19 = sphi %s1020_s19, %s1238_s19   ;;  %s972_s18 = sphi %s1018_s18, %s1237_s18   ;;  %s968_s17 = sphi %s1016_s17, %s1236_s17   ;;  %s964_s16 = sphi %s1014_s16, %s1235_s16   ;;  %s960_s15 = sphi %s1012_s15, %s1234_s15  }
   0x5   : > { %s29_s23 = sadd.s32 1, %s976_s19  ;;  %s144_s24 = sadd.s32 1, %s968_s17 }
   0x6   : > { %p31_p0 = scmp.ge.s32.totalorder %s29_s23, 2  ;;  %p154_p1 = scmp.ne.s32.totalorder %s968_s17, %s964_s16 }
   0x7   : > { %p155_p2 = scmp.eq.s32.totalorder %s775_s21, 1  ;;  %p160_p3 = scmp.ne.s32.totalorder %s964_s16, %s960_s15 }
   0x8   : > { %s1240_s23 = smov (%p31_p0, %s29_s23), 0  ;;  %p161_p5 = scmp.eq.s32.totalorder %s776_s22, 1 }
   0x9   : > { %p1052_p4 = por %p155_p2, %p154_p1  ;;  %s139_s26 = ssub.s32 %s976_s19, %s1240_s23 }
   0xa   : > { %p779_p6 = scmp.ge.s32.totalorder %s980_s20, 1  ;;  %p142_p7 = scmp.eq.s32.totalorder %s139_s26, 0 }
   0xb   : > { %p1059_p8 = por %p161_p5, %p160_p3  ;;  %p219_p9 = scmp.lt.s32.totalorder %s980_s20, 3 }
   0xc   : > { %s1065_s28 = scalar_select %p142_p7, %s968_s17, %s144_s24  }
   0xd   : > { %p220_p10 = pnand %p779_p6, %p219_p9 }
   0xe   : > { %v878_v0 = vld [vmem:[%s1229_s2] sm:$0xff] (!%p220_p10)   ;;  %v982_v1 = vmov (!%p220_p10), 0   ;;  %v879_v2 = vld [vmem:[%s1229_s2 + $0x8] sm:$0xff] (!%p220_p10)   ;;  %v880_v3 = vld [vmem:[%s1229_s2 + $0x10] sm:$0xff] (!%p220_p10)   ;;  %p264_p11 = scmp.lt.s32.totalorder (!%p220_p10), %s972_s18, 1  ;;  %vm420_vm0 = vcmask (!%p220_p10), 154624  }
   0xf   : > { %223 = sbr.rel (%p220_p10) target bundleno = 323 (0x143), region = 36  ;;  %440 = vmatprep.subr.bf16.mxu0 (!%p220_p10), %v982_v1  ;;  %523 = vmatprep.subr.bf16.mxu1 (!%p220_p10), %v982_v1  ;;  %v881_v4 = vld [vmem:[%s1229_s2 + $0x18] sm:$0xff] (!%p220_p10)   ;;  %v882_v7 = vld [vmem:[%s1229_s2 + $0x20] sm:$0xff] (!%p220_p10)   ;;  %v883_v9 = vld [vmem:[%s1229_s2 + $0x28] sm:$0xff] (!%p220_p10)   ;;  %vm433_vm1 = vcmask (!%p220_p10), 1040384   ;;  %vm434_vm2 = vcmask (!%p220_p10), 1041408  }
  0x10   : > { %441 = vmatpush1.bf16.msra.mxu0 (!%p220_p10), %v878_v0  ;;  %524 = vmatpush1.bf16.msra.mxu1 (!%p220_p10), %v878_v0  ;;  %v884_v10 = vld [vmem:[%s1229_s2 + $0x30] sm:$0xff] (!%p220_p10)   ;;  %v885_v11 = vld [vmem:[%s1229_s2 + $0x38] sm:$0xff] (!%p220_p10)   ;;  %v983_v12 = vmov (!%p220_p10), 65535   ;;  %v886_v14 = vld [vmem:[%s1229_s2 + $0x40] sm:$0xff] (!%p220_p10)   ;;  %vm650_vm3 = vcmask (!%p220_p10), 1043456   ;;  %vm653_vm4 = vcmask (!%p220_p10), 523264  }
  0x11   : > { %442 = vmatprep.subr.bf16.mxu0 (!%p220_p10), %v982_v1  ;;  %525 = vmatprep.subr.bf16.mxu1 (!%p220_p10), %v982_v1  ;;  %v435_v13 = vsel (!%p220_p10), %vm433_vm1, 4294967295, %v983_v12  ;;  %v887_v15 = vld [vmem:[%s1229_s2 + $0x48] ss:$0 sps:$4 sm:$0x33] (!%p220_p10)   ;;  %v1144_v26 = vld [vmem:[%s1230_s3] ss:$0 sm:$0xff] (!%p220_p10) }
  0x12   : > { %v436_v16 = vsel (!%p220_p10), %vm434_vm2, %v435_v13, 0  ;;  %s818_s30 = sshll.u32 (!%p220_p10), %s972_s18, 8  ;;  %s984_s10 = smov (!%p220_p10), [#allocation2]  }
  0x13   : > { %v438_v17 = vand.u32 (!%p220_p10), %v887_v15, %v436_v16  ;;  %s1173_s8 = scalar_lea.hbm (!%p220_p10), %s1231_s4, %s818_s30  ;;  %s906_s11 = sshll.u32 (!%p220_p10), %s984_s10, 4  ;;  %s907_s11 = int_to_ptr.vmem [resolvable:$false] %s906_s11 }
  0x14   : > { %443 = vmatpush1.bf16.msra.mxu0 (!%p220_p10), %v879_v2  ;;  %526 = vmatpush1.bf16.msra.mxu1 (!%p220_p10), %v879_v2 }
  0x15   : > { %444 = vmatprep.subr.bf16.mxu0 (!%p220_p10), %v982_v1  ;;  %527 = vmatprep.subr.bf16.mxu1 (!%p220_p10), %v982_v1 }
  0x16   : > { %s265_s9 = scalar_select %p264_p11, %s972_s18, 1 }
  0x18   : > { %445 = vmatpush1.bf16.msra.mxu0 %v880_v3  ;;  %528 = vmatpush1.bf16.msra.mxu1 %v880_v3  ;;  %s816_s12 = sshll.u32 %s265_s9, 6 }
  0x19   : > { %446 = vmatprep.subr.bf16.mxu0 %v982_v1  ;;  %529 = vmatprep.subr.bf16.mxu1 %v982_v1  ;;  %s1092_s21 = scalar_lea.vmem %s1227_s0, %s816_s12  ;;  %s286_s26 = scalar_lea.vmem %s1228_s1, %s816_s12 }
  0x1a   : > { %v890_v5 = vld [vmem:[%s1092_s21 + $0x4] ss:$8 sps:$4 sm:$0xff]   ;;  %v888_v18 = vld [vmem:[%s1092_s21] ss:$8 sps:$4 sm:$0xff]   ;;  %v893_v20 = vld [vmem:[%s1092_s21 + $0x14] ss:$8 sps:$4 sm:$0xff]  }
  0x1b   : > { %v513_v6 = vld [vmem:[%s286_s26] sm:$0xff]  ;;  %804 = vmatprep.mubr.msk.bf16.mxu0 %vm420_vm0, %v890_v5  ;;  %v895_v21 = vld [vmem:[%s1092_s21 + $0x10] ss:$8 sps:$4 sm:$0xff]   ;;  %v899_v24 = vld [vmem:[%s1092_s21 + $0x34] ss:$8 sps:$4 sm:$0xff]   ;;  %s908_s12 = scalar_lea.vmem %s907_s11, 512 }
  0x1c   : > { %447 = vmatpush1.bf16.msra.mxu0 %v881_v4  ;;  %530 = vmatpush1.bf16.msra.mxu1 %v881_v4  ;;  %v809_v8 = vcombine.high %v513_v6, %v513_v6  ;;  %v808_v19 = vcombine.low %v513_v6, %v513_v6  ;;  %v896_v22 = vld [vmem:[%s1092_s21 + $0x24] ss:$8 sps:$4 sm:$0xff]   ;;  %v898_v23 = vld [vmem:[%s1092_s21 + $0x20] ss:$8 sps:$4 sm:$0xff]   ;;  %v901_v25 = vld [vmem:[%s1092_s21 + $0x30] ss:$8 sps:$4 sm:$0xff]  }
  0x1d   : > { %448 = vmatprep.subr.bf16.mxu0 %v982_v1  ;;  %531 = vmatprep.subr.bf16.mxu1 %v982_v1  ;;  %s260_s21 = sand.u32 1, %s964_s16  }
  0x1e   : > { %810 = vmatprep.mubr.msk.bf16.mxu1 %vm420_vm0, %v809_v8  ;;  %s780_s26 = sshll.u32 %s260_s21, 4  ;;  %s1181_s9 = scalar_lea.sflag [#allocation3], %s260_s21 }
  0x1f   : > { %s262_s29 = scalar_lea.vmem [#allocation2], %s780_s26 }
  0x20   : > { %449 = vmatpush1.bf16.msra.mxu0 %v882_v7  ;;  %532 = vmatpush1.bf16.msra.mxu1 %v882_v7  ;;  %s672_s5 = sshll.u32 %s262_s29, 4  ;;  %s1175_s5 = int_to_ptr.vmem [resolvable:$true] %s672_s5 }
  0x21   : > { %450 = vmatprep.subr.bf16.mxu0 %v982_v1  ;;  %533 = vmatprep.subr.bf16.mxu1 %v982_v1  ;;  %s902_s18 = scalar_lea.vmem %s1175_s5, 256  ;;  %p909_p1 = scmp.lt.s32.totalorder %s1175_s5, %s907_s11 }
  0x22   : > { %p903_p12 = scmp.ne.s32.totalorder %s1175_s5, %s902_s18  ;;  %p910_p2 = scmp.lt.s32.totalorder %s908_s12, %s902_s18 }
  0x24   : > { %451 = vmatpush1.bf16.msra.mxu0 %v883_v9  ;;  %534 = vmatpush1.bf16.msra.mxu1 %v883_v9  ;;  %p904_p13 = pnand %p903_p12, %p1052_p4  ;;  %p911_p3 = por %p910_p2, %p909_p1 }
  0x25   : > { %452 = vmatprep.subr.bf16.mxu0 %v982_v1  ;;  %535 = vmatprep.subr.bf16.mxu1 %v982_v1 }
  0x26   : > { %p905_p0 = pneg %p904_p13 }
  0x28   : > { %453 = vmatpush1.bf16.msra.mxu0 %v884_v10  ;;  %536 = vmatpush1.bf16.msra.mxu1 %v884_v10  ;;  %p912_p5 = pnand %p911_p3, %p905_p0 }
  0x29   : > { %454 = vmatprep.subr.bf16.mxu0 %v982_v1  ;;  %537 = vmatprep.subr.bf16.mxu1 %v982_v1 }
  0x2c   : > { %455 = vmatpush1.bf16.msra.mxu0 %v885_v11  ;;  %538 = vmatpush1.bf16.msra.mxu1 %v885_v11 }
  0x2d   : > { %456 = vmatprep.subr.bf16.mxu0 %v982_v1  ;;  %539 = vmatprep.subr.bf16.mxu1 %v982_v1 }
  0x30   : > { %457 = vmatpush1.bf16.msra.mxu0 %v886_v14  ;;  %540 = vmatpush1.bf16.msra.mxu1 %v886_v14 }
  0x31   : > { %458 = vmatprep.subr.bf16.mxu0 %v982_v1  ;;  %541 = vmatprep.subr.bf16.mxu1 %v982_v1 }
  0x34   : > { %459 = vmatpush1.bf16.msra.mxu0 %v438_v17  ;;  %542 = vmatpush1.bf16.msra.mxu1 %v438_v17 }
  0x37   : > { %473 = vmatmul.mubr.bf16.vlgmr.msra.gmra.mrb[0].mxu0 %v888_v18  ;;  %556 = vmatmul.mubr.bf16.vlgmr.msra.gmra.mrb[0].mxu1 %v808_v19 }
  0x38   : > { %805 = vmatprep.mubr.msk.bf16.mxu0 %vm420_vm0, %v893_v20 }
  0x3f   : > { %481 = vmatmul.mubr.bf16.gmra.mrb[4].mxu0 %v895_v21 }
  0x40   : > { %806 = vmatprep.mubr.msk.bf16.mxu0 %vm420_vm0, %v896_v22 }
  0x47   : > { %489 = vmatmul.mubr.bf16.gmra.mrb[8].mxu0 %v898_v23 }
  0x48   : > { %807 = vmatprep.mubr.msk.bf16.mxu0 %vm420_vm0, %v899_v24 }
  0x4f   : > { %497 = vmatmul.mubr.bf16.gmra.mrb[12].mxu0 %v901_v25 }
 0x10a   : > { %v474_v27 = vpop.f32.mrb[0].mxu0  ;;  %v557_v28 = vpop.f32.mrb[0].mxu1 }
 0x10b   : > { %v475_v29 = vadd.f32 %v1144_v26, %v474_v27  ;;  %v558_v30 = vadd.f32 %v1144_v26, %v557_v28  ;;  %v476_v31 = vpop.f32.mrb[1].mxu0  ;;  %v559_v32 = vpop.f32.mrb[1].mxu1 }
 0x10c   : > { %v477_v33 = vpop.f32.mrb[2].mxu0  ;;  %v560_v34 = vpop.f32.mrb[2].mxu1 }
 0x10d   : > { %v505_v35 = vmax.f32 %v475_v29, 0.0  ;;  %v563_v36 = vmax.f32 %v558_v30, 0.0  ;;  %v478_v37 = vadd.f32 %v1144_v26, %v477_v33  ;;  %v479_v38 = vpop.f32.mrb[3].mxu0  ;;  %v561_v39 = vpop.f32.mrb[3].mxu1 }
 0x10f   : > { %v573_v40 = vrot.slane %v505_v35, 4  ;;  %v575_v41 = vrot.slane %v505_v35, 3  ;;  %v565_v42 = vrot.slane %v563_v36, 4  ;;  %v567_v43 = vrot.slane %v563_v36, 3 }
 0x110   : > { %v506_v44 = vmax.f32 %v478_v37, 0.0 }
 0x111   : > { %v577_v45 = vsel %vm433_vm1, %v573_v40, %v575_v41  ;;  %v578_v46 = vmax.f32 %v505_v35, %v573_v40  ;;  %v569_v47 = vsel %vm433_vm1, %v565_v42, %v567_v43  ;;  %v570_v48 = vmax.f32 %v563_v36, %v565_v42 }
 0x112   : > { %v581_v49 = vrot.slane %v506_v44, 4  ;;  %v583_v50 = vrot.slane %v506_v44, 3  ;;  %v482_v51 = vpop.f32.mrb[4].mxu0 }
 0x113   : > { %v579_v52 = vmax.f32 %v578_v46, %v577_v45  ;;  %v571_v53 = vmax.f32 %v570_v48, %v569_v47  ;;  %v483_v54 = vadd.f32 %v1144_v26, %v482_v51  ;;  %v484_v55 = vpop.f32.mrb[5].mxu0 }
 0x114   : > { %v585_v56 = vsel %vm433_vm1, %v581_v49, %v583_v50  ;;  %v586_v57 = vmax.f32 %v506_v44, %v581_v49  ;;  %v485_v58 = vpop.f32.mrb[6].mxu0 }
 0x115   : > { %v636_v59 = vmax.f32 %v571_v53, %v579_v52  ;;  %v507_v60 = vmax.f32 %v483_v54, 0.0  ;;  %v486_v61 = vadd.f32 %v1144_v26, %v485_v58  ;;  %v487_v62 = vpop.f32.mrb[7].mxu0 }
 0x116   : > { %v587_v63 = vmax.f32 %v586_v57, %v585_v56 }
 0x117   : > { %v589_v0 = vrot.slane %v507_v60, 4  ;;  %v591_v1 = vrot.slane %v507_v60, 3  ;;  %v508_v2 = vmax.f32 %v486_v61, 0.0 }
 0x118   : > { %v637_v3 = vmax.f32 %v636_v59, %v587_v63 }
 0x119   : > { %v593_v4 = vsel %vm433_vm1, %v589_v0, %v591_v1  ;;  %v594_v5 = vmax.f32 %v507_v60, %v589_v0  ;;  %v597_v6 = vrot.slane %v508_v2, 4  ;;  %v599_v7 = vrot.slane %v508_v2, 3 }
 0x11a   : > { %v490_v8 = vpop.f32.mrb[8].mxu0 }
 0x11b   : > { %v595_v9 = vmax.f32 %v594_v5, %v593_v4  ;;  %v601_v10 = vsel %vm433_vm1, %v597_v6, %v599_v7  ;;  %v602_v11 = vmax.f32 %v508_v2, %v597_v6  ;;  %v491_v12 = vadd.f32 %v1144_v26, %v490_v8  ;;  %v492_v13 = vpop.f32.mrb[9].mxu0 }
 0x11c   : > { %v493_v14 = vpop.f32.mrb[10].mxu0 }
 0x11d   : > { %v638_v15 = vmax.f32 %v587_v63, %v595_v9  ;;  %v603_v16 = vmax.f32 %v602_v11, %v601_v10  ;;  %v509_v17 = vmax.f32 %v491_v12, 0.0  ;;  %v494_v18 = vadd.f32 %v1144_v26, %v493_v14  ;;  %v495_v19 = vpop.f32.mrb[11].mxu0 }
 0x11f   : > { %v639_v20 = vmax.f32 %v638_v15, %v603_v16  ;;  %v605_v21 = vrot.slane %v509_v17, 4  ;;  %v607_v22 = vrot.slane %v509_v17, 3  ;;  %v510_v23 = vmax.f32 %v494_v18, 0.0 }
 0x121   : > { %v645_v24 = vrot.slane %v639_v20, 4  ;;  %v609_v25 = vsel %vm433_vm1, %v605_v21, %v607_v22  ;;  %v610_v27 = vmax.f32 %v509_v17, %v605_v21  ;;  %v613_v28 = vrot.slane %v510_v23, 4 }
 0x122   : > { %v615_v29 = vrot.slane %v510_v23, 3  ;;  %v498_v30 = vpop.f32.mrb[12].mxu0 }
 0x123   : > { %v611_v31 = vmax.f32 %v610_v27, %v609_v25  ;;  %v618_v32 = vmax.f32 %v510_v23, %v613_v28  ;;  %v499_v33 = vadd.f32 %v1144_v26, %v498_v30  ;;  %v500_v34 = vpop.f32.mrb[13].mxu0  ;;  %v651_v35 = vsel %vm650_vm3, %v637_v3, %v645_v24 }
 0x124   : > { %v617_v36 = vsel %vm433_vm1, %v613_v28, %v615_v29  ;;  %v501_v37 = vpop.f32.mrb[14].mxu0  ;;  %654 = vst.msk [vmem:[%s262_s29] sm:$0xff] %vm653_vm4, %v651_v35 }
 0x125   : > { %v640_v38 = vmax.f32 %v603_v16, %v611_v31  ;;  %v619_v39 = vmax.f32 %v618_v32, %v617_v36  ;;  %v511_v40 = vmax.f32 %v499_v33, 0.0  ;;  %v502_v41 = vadd.f32 %v1144_v26, %v501_v37  ;;  %v503_v42 = vpop.f32.mrb[15].mxu0 }
 0x127   : > { %v641_v43 = vmax.f32 %v640_v38, %v619_v39  ;;  %v621_v44 = vrot.slane %v511_v40, 4  ;;  %v623_v45 = vrot.slane %v511_v40, 3  ;;  %v512_v46 = vmax.f32 %v502_v41, 0.0 }
 0x129   : > { %v625_v47 = vsel %vm433_vm1, %v621_v44, %v623_v45  ;;  %v626_v48 = vmax.f32 %v511_v40, %v621_v44  ;;  %v629_v49 = vrot.slane %v512_v46, 4  ;;  %v631_v50 = vrot.slane %v512_v46, 3 }
 0x12b   : > { %v627_v51 = vmax.f32 %v626_v48, %v625_v47  ;;  %v633_v52 = vsel %vm433_vm1, %v629_v49, %v631_v50  ;;  %v634_v53 = vmax.f32 %v512_v46, %v629_v49 }
 0x12d   : > { %v642_v54 = vmax.f32 %v619_v39, %v627_v51  ;;  %v635_v55 = vmax.f32 %v634_v53, %v633_v52 }
 0x12f   : > { %v643_v26 = vmax.f32 %v642_v54, %v635_v55 }
 0x131   : > { %v648_v56 = vrot.slane %v643_v26, 4 }
 0x133   : > { %v652_v57 = vsel %vm650_vm3, %v641_v43, %v648_v56 }
 0x134   : > { %655 = vst.msk [vmem:[%s262_s29 + $0x8] sm:$0xff] %vm653_vm4, %v652_v57 }
 0x135   : > { %915 = shalt.err (!%p912_p5)
}
 0x136   : > { %s916_s13 = scalar_lea.hbm %s1173_s8, 256  ;;  %s920_s24 = scalar_lea.hbm %s1231_s4, 512 }
 0x137   : > { %p917_p6 = scmp.ne.s32.totalorder %s1173_s8, %s916_s13  ;;  %p921_p10 = scmp.lt.u32.totalorder %s1173_s8, %s1231_s4 }
 0x138   : > { %p922_p11 = scmp.lt.u32.totalorder %s920_s24, %s916_s13  ;;  %p924_p13 = scmp.lt.u32.totalorder %s916_s13, %s1173_s8 }
 0x139   : > { %p918_p7 = pnand %p917_p6, %p1052_p4 }
 0x13a   : > { %p923_p12 = por %p922_p11, %p921_p10 }
 0x13b   : > { %p919_p9 = pneg %p918_p7 }
 0x13c   : > { %p925_p0 = por %p924_p13, %p923_p12 }
 0x13e   : > { %p926_p1 = pnand %p925_p0, %p919_p9 }
 0x140   : > { %929 = shalt.err (!%p926_p1)
}
 0x141   : > { %s985_s29 = smov 128   ;;  %s986_s30 = smov 8  }
 0x142   : > { %819 = dma.vmem_to_hbm [thread:$0]  (%p1052_p4), %s1175_s5, 256, %s1173_s8, %s1181_s9, %s985_s29, %s985_s29, %s986_s30  }
 0x143 PF: > { %p825_p2 = scmp.ge.s32.totalorder %s980_s20, 2  ;;  %s687_s6 = sand.u32 1, %s960_s15  }
 0x144   : > { %s688_s7 = scalar_lea.sflag [#allocation3], %s687_s6 }
 0x145   : > { %p822_p3 = pnand %p825_p2, %p1059_p8 }
 0x147   : > { %955 = dma.done.wait (!%p822_p3), %s688_s7, 256  }
 0x148   : > { %957 = vsyncadd (!%p822_p3), %s688_s7, 4294967040  ;;  %s17_s20 = sadd.s32 1, %s980_s20   ;;  %s1234_s15 = smov %s964_s16 }
 0x149   : > { %p14_p5 = scmp.ge.s32.totalorder %s17_s20, 4   ;;  %s1235_s16 = smov %s968_s17 }
 0x14a   : > { %s1236_s17 = smov %s1065_s28  ;;  %s1237_s18 = smov %s976_s19 }
 0x14b   : > { %s1238_s19 = smov %s1240_s23  ;;  %16 = sbr.rel (!%p14_p5) target bundleno = 4 (0x4), region = 74 }
 0x152   :  { %693 = vsyncpa [#allocation3], 1 }
 0x153   :  { %695 = vsyncpa [#allocation3 + $0x1], 1 }

</bundles_post_ra>
